<compile_context>
chip_gen: v7x
topology: tpu7x:2x2x1
jax: 0.10.0
libtpu: 0.0.40
codegen_flags: <defaults>
</compile_context>

<pallas_src>
import jax
import jax.numpy as jnp
import numpy as np
from jax.experimental import pallas as pl
from jax.experimental.pallas import tpu as pltpu


def _round_up(x, m):
    return ((x + m - 1) // m) * m


def _pick_tf(F_, tf_max):
    """Largest multiple of 128 that divides F_ and is <= tf_max (else F_)."""
    tf = (min(tf_max, F_) // 128) * 128
    while tf >= 128 and F_ % tf != 0:
        tf -= 128
    if tf < 128 or F_ % tf != 0:
        tf = F_
    return tf


# ---------------------------------------------------------------------------
# Resident-weights kernel: one grid step per token tile, full d_ff in one shot.
#   h   = relu(x_tile @ wi)          (tm, F)   f32 accumulation on the MXU
#   out = h @ wo                     (tm, D)   stored lane-dense, no scratch
# ---------------------------------------------------------------------------
def _ffn_resident_kernel(x_ref, wi_ref, wo_ref, o_ref):
    h = jnp.dot(x_ref[...], wi_ref[...], preferred_element_type=jnp.float32)
    h = jnp.maximum(h, 0.0)
    # TODO(synk): nn.Dropout between ReLU and wo is a no-op in eval mode;
    # training-mode dropout (pltpu.prng_* + mask) is not implemented.
    # Cast h back to the model dtype before the second MXU pass (matches
    # PyTorch, which runs the whole FFN in the model dtype).
    o_ref[...] = jnp.dot(h.astype(wo_ref.dtype), wo_ref[...],
                         preferred_element_type=jnp.float32).astype(o_ref.dtype)


# ---------------------------------------------------------------------------
# Streamed fallback kernel: grid = (token tile i, d_ff tile j).  Used only when
# the full weights do not fit the VMEM budget.
# ---------------------------------------------------------------------------
def _ffn_streamed_kernel(x_ref, wi_ref, wo_ref, o_ref, acc_ref):
    j = pl.program_id(1)

    @pl.when(j == 0)
    def _init():
        acc_ref[...] = jnp.zeros_like(acc_ref)

    h = jnp.dot(x_ref[...], wi_ref[...], preferred_element_type=jnp.float32)
    h = jnp.maximum(h, 0.0)
    acc_ref[...] += jnp.dot(h.astype(wo_ref.dtype), wo_ref[...],
                            preferred_element_type=jnp.float32)

    @pl.when(j == pl.num_programs(1) - 1)
    def _finalize():
        o_ref[...] = acc_ref[...].astype(o_ref.dtype)


# ---------------------------------------------------------------------------
# Wrapper: flatten (B, S, D) -> (M, D), pad M to a tile multiple, pick the
# resident or streamed path based on a VMEM budget, reshape back.
# ---------------------------------------------------------------------------
def t5_dense_relu_dense_pallas(x, wi, wo, *, tm_max=512, tf_max=1024,
                               vmem_limit_bytes=64 * 1024 * 1024):
    """x: (B, S, D); wi: (D, F); wo: (F, D). Returns (B, S, D)."""
    B, S, D = x.shape
    Dw, F_ = wi.shape
    assert Dw == D and wo.shape == (F_, D)

    dtype = x.dtype
    x_item = jnp.dtype(dtype).itemsize
    w_item = jnp.dtype(wi.dtype).itemsize
    sublane = 16 if x_item == 2 else 8  # 16-bit dtypes pack 16 rows per vreg

    M = B * S
    # Token tile: as large as possible up to tm_max, a multiple of the sublane
    # packing, and split so there are >= 2 token tiles whenever M allows it
    # (v7x megacore: the "parallel" grid axis is sharded across TensorCores).
    tm = min(tm_max, _round_up(M, sublane))
    if M > sublane and tm >= M:
        tm = _round_up(pl.cdiv(M, 2), sublane)
    M_pad = _round_up(M, tm)
    grid_m = M_pad // tm

    x2 = x.reshape(M, D)
    if M_pad != M:
        x2 = jnp.pad(x2, ((0, M_pad - M), (0, 0)))

    # VMEM budget: decide resident vs. streamed weights.  Count conservatively
    # (weights double-buffered in case Buffered(1) is unavailable, plus the
    # materialized f32 (tm, F) hidden tile and double-buffered x/out tiles).
    budget = int(0.8 * vmem_limit_bytes)
    resident_bytes = (2 * (2 * D * F_) * w_item   # wi + wo, worst-case x2 bufs
                      + 2 * tm * D * x_item       # x tiles
                      + 2 * tm * D * x_item       # out tiles
                      + tm * F_ * 4)              # hidden tile (f32)
    resident = resident_bytes <= budget

    flops = 4 * M_pad * D * F_
    bytes_accessed = 2 * M_pad * D * x_item + 2 * D * F_ * w_item

    def build(weight_buffers):
        def wspec(shape, imap):
            if weight_buffers is None:
                return pl.BlockSpec(shape, imap)
            return pl.BlockSpec(shape, imap,
                                pipeline_mode=pl.Buffered(weight_buffers))

        if resident:
            kernel = _ffn_resident_kernel
            grid = (grid_m,)
            in_specs = [
                pl.BlockSpec((tm, D), lambda i: (i, 0)),
                # Full-extent, constant index -> DMA'd once, kept resident.
                wspec((D, F_), lambda i: (0, 0)),
                wspec((F_, D), lambda i: (0, 0)),
            ]
            out_specs = pl.BlockSpec((tm, D), lambda i: (i, 0))
            scratch = []
            semantics = ("parallel",)
        else:
            tf = _pick_tf(F_, tf_max)
            kernel = _ffn_streamed_kernel
            grid = (grid_m, F_ // tf)
            in_specs = [
                pl.BlockSpec((tm, D), lambda i, j: (i, 0)),
                wspec((D, tf), lambda i, j: (0, j)),
                wspec((tf, D), lambda i, j: (j, 0)),
            ]
            # Output block constant along j -> resident accumulation target.
            out_specs = pl.BlockSpec((tm, D), lambda i, j: (i, 0))
            scratch = [pltpu.VMEM((tm, D), jnp.float32)]
            semantics = ("parallel", "arbitrary")

        return pl.pallas_call(
            kernel,
            out_shape=jax.ShapeDtypeStruct((M_pad, D), dtype),
            grid_spec=pltpu.PrefetchScalarGridSpec(
                num_scalar_prefetch=0,
                grid=grid,
                in_specs=in_specs,
                out_specs=out_specs,
                scratch_shapes=scratch,
            ),
            compiler_params=pltpu.CompilerParams(
                dimension_semantics=semantics,
                vmem_limit_bytes=vmem_limit_bytes,
            ),
            cost_estimate=pl.CostEstimate(
                flops=flops, transcendentals=0, bytes_accessed=bytes_accessed),
        )

    # Resident weights only need one buffer; streamed weight tiles benefit
    # from deeper buffering.  Fall back to the default pipeline if the running
    # JAX rejects pipeline_mode / the requested buffer count.
    preferred_buffers = 1 if resident else 3
    try:
        out2 = build(preferred_buffers)(x2, wi, wo)
    except Exception:
        out2 = build(None)(x2, wi, wo)

    if M_pad != M:
        out2 = out2[:M]
    return out2.reshape(B, S, D)


# ---------------------------------------------------------------------------
# Pure-JAX reference (mirrors the PyTorch forward in eval mode).
# ---------------------------------------------------------------------------
def t5_dense_relu_dense_ref(x, wi, wo):
    h = jnp.maximum(jnp.einsum('bsd,df->bsf', x, wi), 0.0)
    return jnp.einsum('bsf,fd->bsd', h, wo)


if __name__ == "__main__":
    # Small shapes consistent with the module (d_model -> d_ff -> d_model),
    # chosen so the token axis is split into 2 tiles on the resident path.
    B, S = 2, 8
    D = 32       # d_model
    F_ = 256     # d_ff

    key = jax.random.PRNGKey(0)
    kx, ki, ko = jax.random.split(key, 3)

    x = jax.random.normal(kx, (B, S, D), dtype=jnp.float32)
    # Transposed-weight layout: wi (D, F), wo (F, D).
    wi = jax.random.normal(ki, (D, F_), dtype=jnp.float32) * 0.05
    wo = jax.random.normal(ko, (F_, D), dtype=jnp.float32) * 0.05

    ref = jax.block_until_ready(t5_dense_relu_dense_ref(x, wi, wo))

    # f32 path (tight tolerance).
    out = jax.block_until_ready(t5_dense_relu_dense_pallas(x, wi, wo))
    assert out.shape == (B, S, D)
    np.testing.assert_allclose(np.asarray(out), np.asarray(ref),
                               atol=1e-4, rtol=1e-4)

    # bf16 path (f32 accumulation inside the kernel; loose tolerance).
    out_bf16 = t5_dense_relu_dense_pallas(x.astype(jnp.bfloat16),
                                          wi.astype(jnp.bfloat16),
                                          wo.astype(jnp.bfloat16))
    out_bf16 = jax.block_until_ready(out_bf16.astype(jnp.float32))
    np.testing.assert_allclose(np.asarray(out_bf16), np.asarray(ref),
                               atol=5e-2, rtol=5e-2)

    # Ragged token count (exercises the zero-pad / slice path).
    xr = jax.random.normal(kx, (1, 5, D), dtype=jnp.float32)
    out_r = jax.block_until_ready(t5_dense_relu_dense_pallas(xr, wi, wo))
    np.testing.assert_allclose(np.asarray(out_r),
                               np.asarray(t5_dense_relu_dense_ref(xr, wi, wo)),
                               atol=1e-4, rtol=1e-4)

    print("KERNEL_OK")
</pallas_src>

<mosaic_0001>
module attributes {stable_mosaic.version = 11 : i64} {
  func.func @_ffn_resident_kernel(%arg0: i32, %arg1: memref<8x32xf32, #tpu.memory_space<vmem>>, %arg2: memref<32x256xf32, #tpu.memory_space<vmem>>, %arg3: memref<256x32xf32, #tpu.memory_space<vmem>>, %arg4: memref<8x32xf32, #tpu.memory_space<vmem>>) attributes {dimension_semantics = [#tpu.dimension_semantics<parallel>], iteration_bounds = array<i64: 2>, scalar_prefetch = 0 : i64, scratch_operands = 0 : i64, tpu.core_type = #tpu.core_type<tc>, window_params = [{transform_indices = @transform_0, window_bounds = array<i64: 8, 32>}, {pipeline_mode = #tpu.pipeline_mode<synchronous>, transform_indices = @transform_1, window_bounds = array<i64: 32, 256>}, {pipeline_mode = #tpu.pipeline_mode<synchronous>, transform_indices = @transform_2, window_bounds = array<i64: 256, 32>}, {transform_indices = @transform_3, window_bounds = array<i64: 8, 32>}]} {
    %c0 = arith.constant 0 : index
    %c0_0 = arith.constant 0 : index
    %0 = vector.load %arg1[%c0, %c0_0] : memref<8x32xf32, #tpu.memory_space<vmem>>, vector<8x32xf32>
    %c0_1 = arith.constant 0 : index
    %c0_2 = arith.constant 0 : index
    %1 = vector.load %arg2[%c0_1, %c0_2] : memref<32x256xf32, #tpu.memory_space<vmem>>, vector<32x256xf32>
    %cst = arith.constant dense<0.000000e+00> : vector<8x256xf32>
    %2 = tpu.matmul %0, %1, %cst {dimension_numbers = #tpu.dot_dimension_numbers<[1], [0], [0], [1], [0, 0, 1, 1], [], []>} : vector<8x32xf32>, vector<32x256xf32>, vector<8x256xf32> -> vector<8x256xf32>
    %cst_3 = arith.constant 0.000000e+00 : f32
    %3 = vector.broadcast %cst_3 : f32 to vector<8x256xf32>
    %4 = arith.maximumf %2, %3 : vector<8x256xf32>
    %c0_4 = arith.constant 0 : index
    %c0_5 = arith.constant 0 : index
    %5 = vector.load %arg3[%c0_4, %c0_5] : memref<256x32xf32, #tpu.memory_space<vmem>>, vector<256x32xf32>
    %cst_6 = arith.constant dense<0.000000e+00> : vector<8x32xf32>
    %6 = tpu.matmul %4, %5, %cst_6 {dimension_numbers = #tpu.dot_dimension_numbers<[1], [0], [0], [1], [0, 0, 1, 1], [], []>} : vector<8x256xf32>, vector<256x32xf32>, vector<8x32xf32> -> vector<8x32xf32>
    %c0_7 = arith.constant 0 : index
    %c0_8 = arith.constant 0 : index
    %7 = vector.load %arg4[%c0_7, %c0_8] : memref<8x32xf32, #tpu.memory_space<vmem>>, vector<8x32xf32>
    tpu.vector_store %arg4[%c0_7, %c0_8], %6 {strides = array<i32>} : memref<8x32xf32, #tpu.memory_space<vmem>>, vector<8x32xf32>,
    return
  }
  func.func @transform_0(%arg0: i32) -> (i32, i32) {
    %c0_i32 = arith.constant 0 : i32
    %c0_i32_0 = arith.constant 0 : i32
    return %arg0, %c0_i32 : i32, i32
  }
  func.func @transform_1(%arg0: i32) -> (i32, i32) {
    %c0_i32 = arith.constant 0 : i32
    %c0_i32_0 = arith.constant 0 : i32
    %c0_i32_1 = arith.constant 0 : i32
    return %c0_i32, %c0_i32_0 : i32, i32
  }
  func.func @transform_2(%arg0: i32) -> (i32, i32) {
    %c0_i32 = arith.constant 0 : i32
    %c0_i32_0 = arith.constant 0 : i32
    %c0_i32_1 = arith.constant 0 : i32
    return %c0_i32, %c0_i32_0 : i32, i32
  }
  func.func @transform_3(%arg0: i32) -> (i32, i32) {
    %c0_i32 = arith.constant 0 : i32
    %c0_i32_0 = arith.constant 0 : i32
    return %arg0, %c0_i32 : i32, i32
  }
}

module attributes {stable_mosaic.version = 11 : i64} {
  func.func @_ffn_resident_kernel(%arg0: i32, %arg1: memref<8x32xf32, #tpu.memory_space<vmem>>, %arg2: memref<32x256xf32, #tpu.memory_space<vmem>>, %arg3: memref<256x32xf32, #tpu.memory_space<vmem>>, %arg4: memref<8x32xf32, #tpu.memory_space<vmem>>) attributes {dimension_semantics = [#tpu.dimension_semantics<parallel>], iteration_bounds = array<i64: 2>, scalar_prefetch = 0 : i64, scratch_operands = 0 : i64, tpu.core_type = #tpu.core_type<tc>, window_params = [{transform_indices = @transform_0, window_bounds = array<i64: 8, 32>}, {pipeline_mode = #tpu.pipeline_mode<synchronous>, transform_indices = @transform_1, window_bounds = array<i64: 32, 256>}, {pipeline_mode = #tpu.pipeline_mode<synchronous>, transform_indices = @transform_2, window_bounds = array<i64: 256, 32>}, {transform_indices = @transform_3, window_bounds = array<i64: 8, 32>}]} {
    %c0 = arith.constant 0 : index
    %c0_0 = arith.constant 0 : index
    %0 = vector.load %arg1[%c0, %c0_0] : memref<8x32xf32, #tpu.memory_space<vmem>>, vector<8x32xf32>
    %c0_1 = arith.constant 0 : index
    %c0_2 = arith.constant 0 : index
    %1 = vector.load %arg2[%c0_1, %c0_2] : memref<32x256xf32, #tpu.memory_space<vmem>>, vector<32x256xf32>
    %cst = arith.constant dense<0.000000e+00> : vector<8x256xf32>
    %2 = tpu.matmul %0, %1, %cst {dimension_numbers = #tpu.dot_dimension_numbers<[1], [0], [0], [1], [0, 0, 1, 1], [], []>} : vector<8x32xf32>, vector<32x256xf32>, vector<8x256xf32> -> vector<8x256xf32>
    %cst_3 = arith.constant 0.000000e+00 : f32
    %3 = vector.broadcast %cst_3 : f32 to vector<8x256xf32>
    %4 = arith.maximumf %2, %3 : vector<8x256xf32>
    %c0_4 = arith.constant 0 : index
    %c0_5 = arith.constant 0 : index
    %5 = vector.load %arg3[%c0_4, %c0_5] : memref<256x32xf32, #tpu.memory_space<vmem>>, vector<256x32xf32>
    %cst_6 = arith.constant dense<0.000000e+00> : vector<8x32xf32>
    %6 = tpu.matmul %4, %5, %cst_6 {dimension_numbers = #tpu.dot_dimension_numbers<[1], [0], [0], [1], [0, 0, 1, 1], [], []>} : vector<8x256xf32>, vector<256x32xf32>, vector<8x32xf32> -> vector<8x32xf32>
    %c0_7 = arith.constant 0 : index
    %c0_8 = arith.constant 0 : index
    %7 = vector.load %arg4[%c0_7, %c0_8] : memref<8x32xf32, #tpu.memory_space<vmem>>, vector<8x32xf32>
    tpu.vector_store %arg4[%c0_7, %c0_8], %6 {strides = array<i32>} : memref<8x32xf32, #tpu.memory_space<vmem>>, vector<8x32xf32>,
    return
  }
  func.func @transform_0(%arg0: i32) -> (i32, i32) {
    %c0_i32 = arith.constant 0 : i32
    %c0_i32_0 = arith.constant 0 : i32
    return %arg0, %c0_i32 : i32, i32
  }
  func.func @transform_1(%arg0: i32) -> (i32, i32) {
    %c0_i32 = arith.constant 0 : i32
    %c0_i32_0 = arith.constant 0 : i32
    %c0_i32_1 = arith.constant 0 : i32
    return %c0_i32, %c0_i32_0 : i32, i32
  }
  func.func @transform_2(%arg0: i32) -> (i32, i32) {
    %c0_i32 = arith.constant 0 : i32
    %c0_i32_0 = arith.constant 0 : i32
    %c0_i32_1 = arith.constant 0 : i32
    return %c0_i32, %c0_i32_0 : i32, i32
  }
  func.func @transform_3(%arg0: i32) -> (i32, i32) {
    %c0_i32 = arith.constant 0 : i32
    %c0_i32_0 = arith.constant 0 : i32
    return %arg0, %c0_i32 : i32, i32
  }
}

</mosaic_0001>

<bundles_post_ra>
// kernel: tpu_custom_call.1
= control target key start
LH: loop header
LB: loop body
LE: loop exit
PB: predicated region body
PF: predicated region fallthrough
CT: control target
= control target key end

     0   :  { %8 = vsyncpa [#allocation3], 0  ;;  %s1096_s0 = inlined_call_operand.hbm [shape: f32[16,32], index: 0, kind: input, shape index: {}]   ;;  %s1097_s1 = inlined_call_operand.hbm [shape: f32[32,256], index: 1, kind: input, shape index: {}]   ;;  %s1098_s2 = inlined_call_operand.hbm [shape: f32[256,32], index: 2, kind: input, shape index: {}]   ;;  %s1099_s3 = inlined_call_operand.hbm [shape: f32[16,32], index: 3, kind: output, shape index: {}]  }
   0x1   :  { %10 = vsyncpa [#allocation3 + $0x1], 0 }
   0x2   :  { %11 = vsyncpa [#allocation6], 0 }
   0x3   :  { %12 = vsyncpa [#allocation4], 0 }
   0x4   :  { %14 = vsyncpa [#allocation4 + $0x1], 0  ;;  %s858_s12 = smov 0   ;;  %s860_s13 = smov 0  }
   0x5   :  { %s862_s14 = smov 0   ;;  %s864_s15 = smov 0  }
   0x6 LB: > { %s879_s16 = sadd.s32 4294967295, %s827_s15   ;;  %s507_s17 = sadd.s32 4294967294, %s827_s15   ;;  %s827_s15 = sphi %s864_s15, %s1119_s15   ;;  %s823_s14 = sphi %s862_s14, %s1118_s14   ;;  %s819_s13 = sphi %s860_s13, %s1117_s13   ;;  %s815_s12 = sphi %s858_s12, %s1116_s12  }
   0x7   : > { %p40_p0 = scmp.ne.s32.totalorder %s819_s13, %s815_s12  ;;  %p1100_p1 = scmp.eq.s32.totalorder %s879_s16, 0 }
   0x8   : > { %p112_p3 = scmp.eq.s32.totalorder %s507_s17, 1  ;;  %p508_p5 = scmp.ge.s32.totalorder %s827_s15, 1 }
   0x9   : > { %p888_p4 = por %p1100_p1, %p40_p0  ;;  %p119_p7 = scmp.lt.s32.totalorder %s827_s15, 3 }
   0xa   : > { %p893_p6 = por %p112_p3, %p40_p0  ;;  %s829_s21 = smov [#allocation5]  }
   0xb   : > { %s1103_s18 = scalar_select %p888_p4, 1, 0 }
   0xc   : > { %s1104_s19 = scalar_select %p893_p6, 1, 0 }
   0xd   : > { %p898_p8 = pnand %p508_p5, %p119_p7  ;;  %s131_s22 = sshll.u32 %s829_s21, 4  ;;  %s902_s22 = int_to_ptr.vmem [resolvable:$true] %s131_s22 }
   0xe   : > { %s830_s24 = smov [#allocation7]   ;;  %s671_s28 = scalar_lea.hbm %s1097_s1, 1024 }
   0xf   : > { %p611_p9 = pneg %p898_p8  ;;  %s144_s25 = sshll.u32 %s830_s24, 4  ;;  %s913_s25 = int_to_ptr.vmem [resolvable:$true] %s144_s25 }
  0x10   : > { %p672_p12 = scmp.ne.s32.totalorder %s1097_s1, %s671_s28  ;;  %p678_p5 = scmp.lt.u32.totalorder %s671_s28, %s1097_s1 }
  0x11   : > { %p909_p11 = pnand %p611_p9, %p1100_p1 }
  0x13   : > { %p673_p13 = pneg %p909_p11 }
  0x15   : > { %p674_p0 = pnand %p673_p13, %p672_p12 }
  0x17   : > { %p675_p3 = pneg %p674_p0 }
  0x19   : > { %p680_p7 = pnand %p678_p5, %p675_p3 }
  0x1b   : > { %683 = shalt.err (!%p680_p7)
}
  0x1c   : > { %s684_s6 = scalar_lea.vmem %s902_s22, 1024  ;;  %p692_p2 = scmp.lt.s32.totalorder %s902_s22, %s902_s22 }
  0x1d   : > { %p685_p9 = scmp.ne.s32.totalorder %s902_s22, %s684_s6  ;;  %p693_p12 = scmp.lt.s32.totalorder %s684_s6, %s684_s6 }
  0x1f   : > { %p687_p10 = pnand %p685_p9, %p673_p13  ;;  %p694_p0 = por %p693_p12, %p692_p2 }
  0x21   : > { %p688_p1 = pneg %p687_p10 }
  0x23   : > { %p695_p6 = pnand %p694_p0, %p688_p1 }
  0x25   : > { %698 = shalt.err (!%p695_p6)
}
  0x26   : > { %s831_s7 = smov 256   ;;  %s832_s8 = smov 16  }
  0x27   : > { %614 = dma.hbm_to_vmem [thread:$0]  (!%p909_p11), %s1097_s1, 1024, %s902_s22, [#allocation6], %s831_s7, %s831_s7, %s832_s8  }
  0x28   : > { %s699_s21 = scalar_lea.hbm %s1098_s2, 4096 }
  0x29   : > { %p700_p2 = scmp.ne.s32.totalorder %s1098_s2, %s699_s21  ;;  %p706_p10 = scmp.lt.u32.totalorder %s699_s21, %s1098_s2 }
  0x2b   : > { %p702_p1 = pnand %p700_p2, %p673_p13 }
  0x2d   : > { %p703_p6 = pneg %p702_p1 }
  0x2f   : > { %p708_p3 = pnand %p706_p10, %p703_p6 }
  0x31   : > { %711 = shalt.err (!%p708_p3)
}
  0x32   : > { %s712_s22 = scalar_lea.vmem %s913_s25, 4096  ;;  %p720_p12 = scmp.lt.s32.totalorder %s913_s25, %s913_s25 }
  0x33   : > { %p713_p5 = scmp.ne.s32.totalorder %s913_s25, %s712_s22  ;;  %p721_p0 = scmp.lt.s32.totalorder %s712_s22, %s712_s22 }
  0x35   : > { %p715_p7 = pnand %p713_p5, %p673_p13  ;;  %p722_p2 = por %p721_p0, %p720_p12 }
  0x37   : > { %p716_p9 = pneg %p715_p7 }
  0x39   : > { %p723_p1 = pnand %p722_p2, %p716_p9 }
  0x3b   : > { %726 = shalt.err (!%p723_p1)
}
  0x3c   : > { %s833_s29 = smov 128   ;;  %s834_s30 = smov 8  }
  0x3d   : > { %617 = dma.hbm_to_vmem [thread:$0]  (!%p909_p11), %s1098_s2, 4096, %s913_s25, [#allocation6], %s833_s29, %s833_s29, %s834_s30  }
  0x3e   : > { %s968_s6 = sadd.s32 1, %s827_s15   ;;  %s27_s8 = sadd.s32 1, %s823_s14 }
  0x3f   : > { %s24_s7 = ssub.s32 %s827_s15, %s968_s6  ;;  %p34_p6 = scmp.ne.s32.totalorder %s823_s14, %s819_s13 }
  0x40   : > { %p25_p13 = scmp.eq.s32.totalorder %s24_s7, 0  ;;  %p35_p10 = scmp.eq.s32.totalorder %s827_s15, 0 }
  0x41   : > { %p1107_p5 = scmp.eq.s32.totalorder %s879_s16, 1  ;;  %p628_p9 = scmp.lt.s32.totalorder %s827_s15, 2 }
  0x42   : > { %s977_s9 = scalar_select %p25_p13, %s823_s14, %s27_s8  }
  0x43   : > { %p36_p3 = por %p35_p10, %p34_p6  ;;  %p981_p7 = por %p1107_p5, %p34_p6 }
  0x44   : > { %s158_s23 = sand.u32 1, %s823_s14   ;;  %s513_s25 = sshll.u32 %s827_s15, 7 }
  0x45   : > { %s1108_s10 = scalar_select %p981_p7, 1, 0 }
  0x46   : > { %s512_s11 = sshll.u32 %s158_s23, 3  ;;  %s991_s24 = scalar_lea.hbm %s1096_s0, %s513_s25 }
  0x47   : > { %s162_s26 = scalar_lea.vmem [#allocation2], %s512_s11  ;;  %p995_p11 = pnand %p628_p9, %p36_p3 }
  0x48   : > { %s169_s27 = sshll.u32 %s162_s26, 4  ;;  %s159_s22 = scalar_lea.sflag [#allocation3], %s158_s23  ;;  %s993_s27 = int_to_ptr.vmem [resolvable:$true] %s169_s27 }
  0x49   : > { %s727_s29 = scalar_lea.hbm %s991_s24, 128  ;;  %p729_p0 = pneg %p995_p11 }
  0x4a   : > { %p728_p12 = scmp.ne.s32.totalorder %s991_s24, %s727_s29  ;;  %s732_s5 = scalar_lea.hbm %s1096_s0, 256 }
  0x4b   : > { %p733_p13 = scmp.lt.u32.totalorder %s991_s24, %s1096_s0  ;;  %p734_p6 = scmp.lt.u32.totalorder %s732_s5, %s727_s29 }
  0x4c   : > { %p730_p2 = pnand %p729_p0, %p728_p12  ;;  %p736_p3 = scmp.lt.u32.totalorder %s727_s29, %s991_s24 }
  0x4d   : > { %p735_p10 = por %p734_p6, %p733_p13 }
  0x4e   : > { %p731_p1 = pneg %p730_p2 }
  0x4f   : > { %p737_p5 = por %p736_p3, %p735_p10 }
  0x51   : > { %p738_p9 = pnand %p737_p5, %p731_p1 }
  0x53   : > { %741 = shalt.err (!%p738_p9)
}
  0x54   : > { %s742_s23 = scalar_lea.vmem %s993_s27, 128  ;;  %s835_s11 = smov [#allocation2]  }
  0x55   : > { %p743_p12 = scmp.ne.s32.totalorder %s993_s27, %s742_s23  ;;  %s747_s25 = sshll.u32 %s835_s11, 4  ;;  %s748_s25 = int_to_ptr.vmem [resolvable:$false] %s747_s25 }
  0x56   : > { %s749_s17 = scalar_lea.vmem %s748_s25, 256  ;;  %p750_p4 = scmp.lt.s32.totalorder %s993_s27, %s748_s25 }
  0x57   : > { %p745_p2 = pnand %p743_p12, %p729_p0  ;;  %p751_p13 = scmp.lt.s32.totalorder %s749_s17, %s742_s23 }
  0x59   : > { %p746_p7 = pneg %p745_p2  ;;  %p752_p6 = por %p751_p13, %p750_p4 }
  0x5b   : > { %p753_p10 = pnand %p752_p6, %p746_p7 }
  0x5d   : > { %756 = shalt.err (!%p753_p10)
}
  0x5e   : > { %621 = dma.hbm_to_vmem [thread:$0]  (!%p995_p11), %s991_s24, 128, %s993_s27, %s159_s22  }
  0x5f   : > { %178 = sbr.rel (%p898_p8) target bundleno = 562 (0x232), region = 32  ;;  %s1027_s21 = sand.u32 (!%p898_p8), 1, %s819_s13  }
  0x60   : > { %s515_s26 = sshll.u32 (!%p898_p8), %s1027_s21, 3  ;;  %s181_s29 = scalar_lea.sflag (!%p898_p8), [#allocation3], %s1027_s21 }
  0x61   : > { %s1033_s30 = scalar_lea.vmem (!%p898_p8), [#allocation2], %s515_s26  ;;  %p1110_p4 = scmp.ne.s32.totalorder (!%p898_p8), %s1103_s18, 0 }
  0x66   : > { %802 = dma.done.wait (%p1110_p4), %s181_s29, 128  }
  0x67   : > { %804 = vsyncadd (%p1110_p4), %s181_s29, 4294967168  ;;  %p1111_p7 = scmp.eq.s32.totalorder %s879_s16, 0 }
  0x69   : > { %806 = dma.done.wait (%p1111_p7), [#allocation6], 5120   ;;  %p1112_p8 = pmov %p1111_p7 }
  0x6a   : > { %v836_v0 = vmov 0.0   ;;  %v217_v1 = vld [vmem:[#allocation5 + $0x8] sm:$0xff]  ;;  %v219_v2 = vld [vmem:[#allocation5 + $0x18] sm:$0xff]  ;;  %v216_v3 = vld [vmem:[#allocation5] sm:$0xff]  ;;  %vm224_vm0 = vcmask 261120   ;;  %s521_s18 = sshll.u32 %s879_s16, 7 }
  0x6b   : > { %808 = vsyncadd (%p1112_p8), [#allocation6], 4294962176  ;;  %292 = vmatprep.mubr.f32.mxu0 %v836_v0  ;;  %v559_v4 = vpack.c.bf16 %v219_v2, %v217_v1  ;;  %v218_v5 = vld [vmem:[#allocation5 + $0x10] sm:$0xff]  ;;  %v221_v6 = vld [vmem:[#allocation5 + $0x28] sm:$0xff]  ;;  %s214_s20 = scalar_lea.vmem [#allocation8], %s515_s26  ;;  %s1051_s22 = scalar_lea.hbm %s1099_s3, %s521_s18 }
  0x6c   : > { %v223_v7 = vld [vmem:[#allocation5 + $0x38] sm:$0xff]  ;;  %v561_v8 = vpack.c.bf16 %v218_v5, %v216_v3  ;;  %v220_v10 = vld [vmem:[#allocation5 + $0x20] sm:$0xff]  ;;  %v222_v11 = vld [vmem:[#allocation5 + $0x30] sm:$0xff]  ;;  %s418_s24 = sshll.u32 %s214_s20, 4  ;;  %s405_s4 = scalar_lea.sflag [#allocation4], %s1027_s21  ;;  %s1053_s24 = int_to_ptr.vmem [resolvable:$true] %s418_s24 }
  0x6d   : > { %v563_v9 = vpack.c.bf16 %v223_v7, %v221_v6  ;;  %560 = vmatprep.subr.bf16.mxu0 %v559_v4  ;;  %v317_v12 = vld [vmem:[#allocation7 + $0x80] sm:$0xff]  ;;  %v318_v13 = vld [vmem:[#allocation7 + $0x88] sm:$0xff]  ;;  %v565_v15 = vpack.c.bf16 %v222_v11, %v220_v10  ;;  %v319_v18 = vld [vmem:[#allocation7 + $0x90] sm:$0xff]  ;;  %s757_s16 = scalar_lea.vmem %s1053_s24, 128  ;;  %p1113_p0 = scmp.ne.s32.totalorder %s1108_s10, 0 }
  0x6e   : > { %v301_v14 = vld [vmem:[#allocation7] sm:$0xff]  ;;  %562 = vmatpush1.bf16.msra.mxu0 %v561_v8  ;;  %v567_v16 = vpack.c.bf16 %v318_v13, %v317_v12  ;;  %v302_v17 = vld [vmem:[#allocation7 + $0x8] sm:$0xff]  ;;  %v320_v19 = vld [vmem:[#allocation7 + $0x98] sm:$0xff]  ;;  %p758_p11 = scmp.ne.s32.totalorder %s1053_s24, %s757_s16  ;;  %s837_s5 = smov [#allocation8]  }
  0x6f   : > { %564 = vmatprep.subr.bf16.mxu0 %v563_v9  ;;  %v569_v20 = vpack.c.bf16 %v302_v17, %v301_v14  ;;  %v571_v21 = vpack.c.bf16 %v320_v19, %v319_v18  ;;  %v303_v22 = vld [vmem:[#allocation7 + $0x10] sm:$0xff]  ;;  %v304_v23 = vld [vmem:[#allocation7 + $0x18] sm:$0xff]  ;;  %v321_v24 = vld [vmem:[#allocation7 + $0xa0] sm:$0xff]  ;;  %s761_s7 = sshll.u32 %s837_s5, 4  ;;  %s762_s7 = int_to_ptr.vmem [resolvable:$false] %s761_s7 }
  0x70   : > { %568 = vmatprep.subr.bf16.mxu1 %v567_v16  ;;  %v322_v25 = vld [vmem:[#allocation7 + $0xa8] sm:$0xff]  ;;  %v573_v26 = vpack.c.bf16 %v304_v23, %v303_v22  ;;  %v215_v27 = vld [vmem:[%s1033_s30] sm:$0xff]  ;;  %v305_v29 = vld [vmem:[#allocation7 + $0x20] sm:$0xff]  ;;  %p759_p1 = pnand %p758_p11, %p1113_p0  ;;  %s763_s8 = scalar_lea.vmem %s762_s7, 256 }
  0x71   : > { %570 = vmatpush3.bf16.msra.mxu1 %v569_v20  ;;  %v575_v28 = vpack.c.bf16 %v322_v25, %v321_v24  ;;  %v306_v30 = vld [vmem:[#allocation7 + $0x28] sm:$0xff]  ;;  %v323_v31 = vld [vmem:[#allocation7 + $0xb0] sm:$0xff]  ;;  %v324_v32 = vld [vmem:[#allocation7 + $0xb8] sm:$0xff]  ;;  %p764_p5 = scmp.lt.s32.totalorder %s1053_s24, %s762_s7  ;;  %p765_p9 = scmp.lt.s32.totalorder %s763_s8, %s757_s16 }
  0x72   : > { %566 = vmatpush1.bf16.msra.mxu0 %v565_v15  ;;  %572 = vmatprep.subr.bf16.mxu1 %v571_v21  ;;  %v577_v33 = vpack.c.bf16 %v306_v30, %v305_v29  ;;  %v579_v34 = vpack.c.bf16 %v324_v32, %v323_v31  ;;  %v307_v35 = vld [vmem:[#allocation7 + $0x30] sm:$0xff]  ;;  %v308_v36 = vld [vmem:[#allocation7 + $0x38] sm:$0xff]  ;;  %v325_v37 = vld [vmem:[#allocation7 + $0xc0] sm:$0xff]  ;;  %p760_p3 = pneg %p759_p1 }
  0x73   : > { %v326_v38 = vld [vmem:[#allocation7 + $0xc8] sm:$0xff]  ;;  %v581_v39 = vpack.c.bf16 %v308_v36, %v307_v35  ;;  %v309_v41 = vld [vmem:[#allocation7 + $0x40] sm:$0xff]  ;;  %v327_v43 = vld [vmem:[#allocation7 + $0xd0] sm:$0xff]  ;;  %p766_p12 = por %p765_p9, %p764_p5 }
  0x74   : > { %v583_v40 = vpack.c.bf16 %v326_v38, %v325_v37  ;;  %v310_v42 = vld [vmem:[#allocation7 + $0x48] sm:$0xff]  ;;  %v328_v44 = vld [vmem:[#allocation7 + $0xd8] sm:$0xff]  ;;  %v311_v47 = vld [vmem:[#allocation7 + $0x50] sm:$0xff] }
  0x75   : > { %519 = vmatmul.mubr.msk.f32.vlgmr.msra.gmra.mrb[0].mxu0 %vm224_vm0, %v215_v27  ;;  %574 = vmatpush3.bf16.msra.mxu1 %v573_v26  ;;  %v585_v45 = vpack.c.bf16 %v310_v42, %v309_v41  ;;  %v587_v46 = vpack.c.bf16 %v328_v44, %v327_v43  ;;  %v312_v48 = vld [vmem:[#allocation7 + $0x58] sm:$0xff]  ;;  %v329_v49 = vld [vmem:[#allocation7 + $0xe0] sm:$0xff]  ;;  %v330_v50 = vld [vmem:[#allocation7 + $0xe8] sm:$0xff]  ;;  %p767_p2 = pnand %p766_p12, %p760_p3 }
  0x76   : > { %576 = vmatprep.subr.bf16.mxu1 %v575_v28  ;;  %v589_v51 = vpack.c.bf16 %v312_v48, %v311_v47  ;;  %v591_v52 = vpack.c.bf16 %v330_v50, %v329_v49  ;;  %v313_v53 = vld [vmem:[#allocation7 + $0x60] sm:$0xff]  ;;  %v314_v54 = vld [vmem:[#allocation7 + $0x68] sm:$0xff]  ;;  %v331_v56 = vld [vmem:[#allocation7 + $0xf0] sm:$0xff] }
  0x77   : > { %v593_v55 = vpack.c.bf16 %v314_v54, %v313_v53  ;;  %v332_v57 = vld [vmem:[#allocation7 + $0xf8] sm:$0xff]  ;;  %v315_v59 = vld [vmem:[#allocation7 + $0x70] sm:$0xff] }
  0x78   : > { %v595_v58 = vpack.c.bf16 %v332_v57, %v331_v56  ;;  %v316_v60 = vld [vmem:[#allocation7 + $0x78] sm:$0xff] }
  0x79   : > { %578 = vmatpush3.bf16.msra.mxu1 %v577_v33  ;;  %v597_v61 = vpack.c.bf16 %v316_v60, %v315_v59 }
  0x7a   : > { %580 = vmatprep.subr.bf16.mxu1 %v579_v34 }
  0x7d   : > { %582 = vmatpush3.bf16.msra.mxu1 %v581_v39 }
  0x7e   : > { %584 = vmatprep.subr.bf16.mxu1 %v583_v40 }
  0x81   : > { %586 = vmatpush3.bf16.msra.mxu1 %v585_v45 }
  0x82   : > { %588 = vmatprep.subr.bf16.mxu1 %v587_v46 }
  0x85   : > { %590 = vmatpush3.bf16.msra.mxu1 %v589_v51 }
  0x86   : > { %592 = vmatprep.subr.bf16.mxu1 %v591_v52 }
  0x89   : > { %594 = vmatpush3.bf16.msra.mxu1 %v593_v55 }
  0x8a   : > { %596 = vmatprep.subr.bf16.mxu1 %v595_v58 }
  0x8d   : > { %598 = vmatpush3.bf16.msra.mxu1 %v597_v61 }
 0x148   : > { %v294_v62 = vpop.f32.mrb[0].mxu0 }
 0x149   : > { %v296_v63 = vpop.f32.mrb[1].mxu0  ;;  %v299_v1 = vmax.f32 %v294_v62, 0.0 }
 0x14a   : > { %v300_v0 = vmax.f32 %v296_v63, 0.0 }
 0x14c   : > { %397 = vmatprep.mubr.f32.mxu1 %v300_v0 }
 0x14d   : > { %398 = vmatmul.mubr.f32.vlgmr.msra.gmra.mrb[0].mxu1 %v299_v1 }
 0x220   : > { %v556_v2 = vpop.f32.mrb[0].mxu1 }
 0x221   : > { %v557_v3 = vpop.f32.mrb[1].mxu1 }
 0x222   : > { %v558_v4 = vadd.f32 %v557_v3, %v556_v2 }
 0x224   : > { %403 = vst.msk [vmem:[%s214_s20] sm:$0xff] %vm224_vm0, %v558_v4 }
 0x225   : > { %770 = shalt.err (!%p767_p2)
}
 0x226   : > { %s771_s23 = scalar_lea.hbm %s1051_s22, 128  ;;  %s775_s17 = scalar_lea.hbm %s1099_s3, 256 }
 0x227   : > { %p772_p13 = scmp.ne.s32.totalorder %s1051_s22, %s771_s23  ;;  %p776_p4 = scmp.lt.u32.totalorder %s1051_s22, %s1099_s3 }
 0x228   : > { %p777_p7 = scmp.lt.u32.totalorder %s775_s17, %s771_s23  ;;  %p779_p11 = scmp.lt.u32.totalorder %s771_s23, %s1051_s22 }
 0x229   : > { %p773_p6 = pnand %p772_p13, %p1113_p0 }
 0x22a   : > { %p778_p8 = por %p777_p7, %p776_p4 }
 0x22b   : > { %p774_p10 = pneg %p773_p6 }
 0x22c   : > { %p780_p1 = por %p779_p11, %p778_p8 }
 0x22e   : > { %p781_p3 = pnand %p780_p1, %p774_p10 }
 0x230   : > { %784 = shalt.err (!%p781_p3)
}
 0x231   : > { %609 = dma.vmem_to_hbm [thread:$0]  (%p1113_p0), %s1053_s24, 128, %s1051_s22, %s405_s4  }
 0x232 PF: > { %s430_s29 = sand.u32 1, %s815_s12   ;;  %p1114_p5 = scmp.ne.s32.totalorder %s1104_s19, 0 }
 0x233   : > { %p1115_p9 = scmp.ge.s32.totalorder %s827_s15, 2  ;;  %s431_s30 = scalar_lea.sflag [#allocation4], %s430_s29 }
 0x235   : > { %p623_p12 = pnand %p1115_p9, %p1114_p5 }
 0x237   : > { %810 = dma.done.wait (!%p623_p12), %s431_s30, 128  }
 0x238   : > { %812 = vsyncadd (!%p623_p12), %s431_s30, 4294967168  ;;  %p17_p2 = scmp.ge.s32.totalorder %s968_s6, 4   ;;  %s1116_s12 = smov %s819_s13 }
 0x239   : > { %s1117_s13 = smov %s823_s14  ;;  %s1118_s14 = smov %s977_s9 }
 0x23a   : > { %s1119_s15 = smov %s968_s6  ;;  %19 = sbr.rel (!%p17_p2) target bundleno = 6 (0x6), region = 85 }
 0x241   :  { %436 = vsyncpa [#allocation3], 1 }
 0x242   :  { %438 = vsyncpa [#allocation3 + $0x1], 1 }
 0x243   :  { %439 = vsyncpa [#allocation6], 1 }
 0x244   :  { %440 = vsyncpa [#allocation4], 1 }
 0x245   :  { %442 = vsyncpa [#allocation4 + $0x1], 1 }

// kernel: tpu_custom_call.1
= control target key start
LH: loop header
LB: loop body
LE: loop exit
PB: predicated region body
PF: predicated region fallthrough
CT: control target
= control target key end

     0   :  { %8 = vsyncpa [#allocation3], 0  ;;  %s1096_s0 = inlined_call_operand.hbm [shape: f32[16,32], index: 0, kind: input, shape index: {}]   ;;  %s1097_s1 = inlined_call_operand.hbm [shape: f32[32,256], index: 1, kind: input, shape index: {}]   ;;  %s1098_s2 = inlined_call_operand.hbm [shape: f32[256,32], index: 2, kind: input, shape index: {}]   ;;  %s1099_s3 = inlined_call_operand.hbm [shape: f32[16,32], index: 3, kind: output, shape index: {}]  }
   0x1   :  { %10 = vsyncpa [#allocation3 + $0x1], 0 }
   0x2   :  { %11 = vsyncpa [#allocation6], 0 }
   0x3   :  { %12 = vsyncpa [#allocation4], 0 }
   0x4   :  { %14 = vsyncpa [#allocation4 + $0x1], 0  ;;  %s858_s12 = smov 0   ;;  %s860_s13 = smov 0  }
   0x5   :  { %s862_s14 = smov 0   ;;  %s864_s15 = smov 0  }
   0x6 LB: > { %s879_s16 = sadd.s32 4294967295, %s827_s15   ;;  %s507_s17 = sadd.s32 4294967294, %s827_s15   ;;  %s827_s15 = sphi %s864_s15, %s1119_s15   ;;  %s823_s14 = sphi %s862_s14, %s1118_s14   ;;  %s819_s13 = sphi %s860_s13, %s1117_s13   ;;  %s815_s12 = sphi %s858_s12, %s1116_s12  }
   0x7   : > { %p40_p0 = scmp.ne.s32.totalorder %s819_s13, %s815_s12  ;;  %p1100_p1 = scmp.eq.s32.totalorder %s879_s16, 0 }
   0x8   : > { %p112_p3 = scmp.eq.s32.totalorder %s507_s17, 1  ;;  %p508_p5 = scmp.ge.s32.totalorder %s827_s15, 1 }
   0x9   : > { %p888_p4 = por %p1100_p1, %p40_p0  ;;  %p119_p7 = scmp.lt.s32.totalorder %s827_s15, 3 }
   0xa   : > { %p893_p6 = por %p112_p3, %p40_p0  ;;  %s829_s21 = smov [#allocation5]  }
   0xb   : > { %s1103_s18 = scalar_select %p888_p4, 1, 0 }
   0xc   : > { %s1104_s19 = scalar_select %p893_p6, 1, 0 }
   0xd   : > { %p898_p8 = pnand %p508_p5, %p119_p7  ;;  %s131_s22 = sshll.u32 %s829_s21, 4  ;;  %s902_s22 = int_to_ptr.vmem [resolvable:$true] %s131_s22 }
   0xe   : > { %s830_s24 = smov [#allocation7]   ;;  %s671_s28 = scalar_lea.hbm %s1097_s1, 1024 }
   0xf   : > { %p611_p9 = pneg %p898_p8  ;;  %s144_s25 = sshll.u32 %s830_s24, 4  ;;  %s913_s25 = int_to_ptr.vmem [resolvable:$true] %s144_s25 }
  0x10   : > { %p672_p12 = scmp.ne.s32.totalorder %s1097_s1, %s671_s28  ;;  %p678_p5 = scmp.lt.u32.totalorder %s671_s28, %s1097_s1 }
  0x11   : > { %p909_p11 = pnand %p611_p9, %p1100_p1 }
  0x13   : > { %p673_p13 = pneg %p909_p11 }
  0x15   : > { %p674_p0 = pnand %p673_p13, %p672_p12 }
  0x17   : > { %p675_p3 = pneg %p674_p0 }
  0x19   : > { %p680_p7 = pnand %p678_p5, %p675_p3 }
  0x1b   : > { %683 = shalt.err (!%p680_p7)
}
  0x1c   : > { %s684_s6 = scalar_lea.vmem %s902_s22, 1024  ;;  %p692_p2 = scmp.lt.s32.totalorder %s902_s22, %s902_s22 }
  0x1d   : > { %p685_p9 = scmp.ne.s32.totalorder %s902_s22, %s684_s6  ;;  %p693_p12 = scmp.lt.s32.totalorder %s684_s6, %s684_s6 }
  0x1f   : > { %p687_p10 = pnand %p685_p9, %p673_p13  ;;  %p694_p0 = por %p693_p12, %p692_p2 }
  0x21   : > { %p688_p1 = pneg %p687_p10 }
  0x23   : > { %p695_p6 = pnand %p694_p0, %p688_p1 }
  0x25   : > { %698 = shalt.err (!%p695_p6)
}
  0x26   : > { %s831_s7 = smov 256   ;;  %s832_s8 = smov 16  }
  0x27   : > { %614 = dma.hbm_to_vmem [thread:$0]  (!%p909_p11), %s1097_s1, 1024, %s902_s22, [#allocation6], %s831_s7, %s831_s7, %s832_s8  }
  0x28   : > { %s699_s21 = scalar_lea.hbm %s1098_s2, 4096 }
  0x29   : > { %p700_p2 = scmp.ne.s32.totalorder %s1098_s2, %s699_s21  ;;  %p706_p10 = scmp.lt.u32.totalorder %s699_s21, %s1098_s2 }
  0x2b   : > { %p702_p1 = pnand %p700_p2, %p673_p13 }
  0x2d   : > { %p703_p6 = pneg %p702_p1 }
  0x2f   : > { %p708_p3 = pnand %p706_p10, %p703_p6 }
  0x31   : > { %711 = shalt.err (!%p708_p3)
}
  0x32   : > { %s712_s22 = scalar_lea.vmem %s913_s25, 4096  ;;  %p720_p12 = scmp.lt.s32.totalorder %s913_s25, %s913_s25 }
  0x33   : > { %p713_p5 = scmp.ne.s32.totalorder %s913_s25, %s712_s22  ;;  %p721_p0 = scmp.lt.s32.totalorder %s712_s22, %s712_s22 }
  0x35   : > { %p715_p7 = pnand %p713_p5, %p673_p13  ;;  %p722_p2 = por %p721_p0, %p720_p12 }
  0x37   : > { %p716_p9 = pneg %p715_p7 }
  0x39   : > { %p723_p1 = pnand %p722_p2, %p716_p9 }
  0x3b   : > { %726 = shalt.err (!%p723_p1)
}
  0x3c   : > { %s833_s29 = smov 128   ;;  %s834_s30 = smov 8  }
  0x3d   : > { %617 = dma.hbm_to_vmem [thread:$0]  (!%p909_p11), %s1098_s2, 4096, %s913_s25, [#allocation6], %s833_s29, %s833_s29, %s834_s30  }
  0x3e   : > { %s968_s6 = sadd.s32 1, %s827_s15   ;;  %s27_s8 = sadd.s32 1, %s823_s14 }
  0x3f   : > { %s24_s7 = ssub.s32 %s827_s15, %s968_s6  ;;  %p34_p6 = scmp.ne.s32.totalorder %s823_s14, %s819_s13 }
  0x40   : > { %p25_p13 = scmp.eq.s32.totalorder %s24_s7, 0  ;;  %p35_p10 = scmp.eq.s32.totalorder %s827_s15, 0 }
  0x41   : > { %p1107_p5 = scmp.eq.s32.totalorder %s879_s16, 1  ;;  %p628_p9 = scmp.lt.s32.totalorder %s827_s15, 2 }
  0x42   : > { %s977_s9 = scalar_select %p25_p13, %s823_s14, %s27_s8  }
  0x43   : > { %p36_p3 = por %p35_p10, %p34_p6  ;;  %p981_p7 = por %p1107_p5, %p34_p6 }
  0x44   : > { %s158_s23 = sand.u32 1, %s823_s14   ;;  %s513_s25 = sshll.u32 %s827_s15, 7 }
  0x45   : > { %s1108_s10 = scalar_select %p981_p7, 1, 0 }
  0x46   : > { %s512_s11 = sshll.u32 %s158_s23, 3  ;;  %s991_s24 = scalar_lea.hbm %s1096_s0, %s513_s25 }
  0x47   : > { %s162_s26 = scalar_lea.vmem [#allocation2], %s512_s11  ;;  %p995_p11 = pnand %p628_p9, %p36_p3 }
  0x48   : > { %s169_s27 = sshll.u32 %s162_s26, 4  ;;  %s159_s22 = scalar_lea.sflag [#allocation3], %s158_s23  ;;  %s993_s27 = int_to_ptr.vmem [resolvable:$true] %s169_s27 }
  0x49   : > { %s727_s29 = scalar_lea.hbm %s991_s24, 128  ;;  %p729_p0 = pneg %p995_p11 }
  0x4a   : > { %p728_p12 = scmp.ne.s32.totalorder %s991_s24, %s727_s29  ;;  %s732_s5 = scalar_lea.hbm %s1096_s0, 256 }
  0x4b   : > { %p733_p13 = scmp.lt.u32.totalorder %s991_s24, %s1096_s0  ;;  %p734_p6 = scmp.lt.u32.totalorder %s732_s5, %s727_s29 }
  0x4c   : > { %p730_p2 = pnand %p729_p0, %p728_p12  ;;  %p736_p3 = scmp.lt.u32.totalorder %s727_s29, %s991_s24 }
  0x4d   : > { %p735_p10 = por %p734_p6, %p733_p13 }
  0x4e   : > { %p731_p1 = pneg %p730_p2 }
  0x4f   : > { %p737_p5 = por %p736_p3, %p735_p10 }
  0x51   : > { %p738_p9 = pnand %p737_p5, %p731_p1 }
  0x53   : > { %741 = shalt.err (!%p738_p9)
}
  0x54   : > { %s742_s23 = scalar_lea.vmem %s993_s27, 128  ;;  %s835_s11 = smov [#allocation2]  }
  0x55   : > { %p743_p12 = scmp.ne.s32.totalorder %s993_s27, %s742_s23  ;;  %s747_s25 = sshll.u32 %s835_s11, 4  ;;  %s748_s25 = int_to_ptr.vmem [resolvable:$false] %s747_s25 }
  0x56   : > { %s749_s17 = scalar_lea.vmem %s748_s25, 256  ;;  %p750_p4 = scmp.lt.s32.totalorder %s993_s27, %s748_s25 }
  0x57   : > { %p745_p2 = pnand %p743_p12, %p729_p0  ;;  %p751_p13 = scmp.lt.s32.totalorder %s749_s17, %s742_s23 }
  0x59   : > { %p746_p7 = pneg %p745_p2  ;;  %p752_p6 = por %p751_p13, %p750_p4 }
  0x5b   : > { %p753_p10 = pnand %p752_p6, %p746_p7 }
  0x5d   : > { %756 = shalt.err (!%p753_p10)
}
  0x5e   : > { %621 = dma.hbm_to_vmem [thread:$0]  (!%p995_p11), %s991_s24, 128, %s993_s27, %s159_s22  }
  0x5f   : > { %178 = sbr.rel (%p898_p8) target bundleno = 562 (0x232), region = 32  ;;  %s1027_s21 = sand.u32 (!%p898_p8), 1, %s819_s13  }
  0x60   : > { %s515_s26 = sshll.u32 (!%p898_p8), %s1027_s21, 3  ;;  %s181_s29 = scalar_lea.sflag (!%p898_p8), [#allocation3], %s1027_s21 }
  0x61   : > { %s1033_s30 = scalar_lea.vmem (!%p898_p8), [#allocation2], %s515_s26  ;;  %p1110_p4 = scmp.ne.s32.totalorder (!%p898_p8), %s1103_s18, 0 }
  0x66   : > { %802 = dma.done.wait (%p1110_p4), %s181_s29, 128  }
  0x67   : > { %804 = vsyncadd (%p1110_p4), %s181_s29, 4294967168  ;;  %p1111_p7 = scmp.eq.s32.totalorder %s879_s16, 0 }
  0x69   : > { %806 = dma.done.wait (%p1111_p7), [#allocation6], 5120   ;;  %p1112_p8 = pmov %p1111_p7 }
  0x6a   : > { %v836_v0 = vmov 0.0   ;;  %v217_v1 = vld [vmem:[#allocation5 + $0x8] sm:$0xff]  ;;  %v219_v2 = vld [vmem:[#allocation5 + $0x18] sm:$0xff]  ;;  %v216_v3 = vld [vmem:[#allocation5] sm:$0xff]  ;;  %vm224_vm0 = vcmask 261120   ;;  %s521_s18 = sshll.u32 %s879_s16, 7 }
  0x6b   : > { %808 = vsyncadd (%p1112_p8), [#allocation6], 4294962176  ;;  %292 = vmatprep.mubr.f32.mxu0 %v836_v0  ;;  %v559_v4 = vpack.c.bf16 %v219_v2, %v217_v1  ;;  %v218_v5 = vld [vmem:[#allocation5 + $0x10] sm:$0xff]  ;;  %v221_v6 = vld [vmem:[#allocation5 + $0x28] sm:$0xff]  ;;  %s214_s20 = scalar_lea.vmem [#allocation8], %s515_s26  ;;  %s1051_s22 = scalar_lea.hbm %s1099_s3, %s521_s18 }
  0x6c   : > { %v223_v7 = vld [vmem:[#allocation5 + $0x38] sm:$0xff]  ;;  %v561_v8 = vpack.c.bf16 %v218_v5, %v216_v3  ;;  %v220_v10 = vld [vmem:[#allocation5 + $0x20] sm:$0xff]  ;;  %v222_v11 = vld [vmem:[#allocation5 + $0x30] sm:$0xff]  ;;  %s418_s24 = sshll.u32 %s214_s20, 4  ;;  %s405_s4 = scalar_lea.sflag [#allocation4], %s1027_s21  ;;  %s1053_s24 = int_to_ptr.vmem [resolvable:$true] %s418_s24 }
  0x6d   : > { %v563_v9 = vpack.c.bf16 %v223_v7, %v221_v6  ;;  %560 = vmatprep.subr.bf16.mxu0 %v559_v4  ;;  %v317_v12 = vld [vmem:[#allocation7 + $0x80] sm:$0xff]  ;;  %v318_v13 = vld [vmem:[#allocation7 + $0x88] sm:$0xff]  ;;  %v565_v15 = vpack.c.bf16 %v222_v11, %v220_v10  ;;  %v319_v18 = vld [vmem:[#allocation7 + $0x90] sm:$0xff]  ;;  %s757_s16 = scalar_lea.vmem %s1053_s24, 128  ;;  %p1113_p0 = scmp.ne.s32.totalorder %s1108_s10, 0 }
  0x6e   : > { %v301_v14 = vld [vmem:[#allocation7] sm:$0xff]  ;;  %562 = vmatpush1.bf16.msra.mxu0 %v561_v8  ;;  %v567_v16 = vpack.c.bf16 %v318_v13, %v317_v12  ;;  %v302_v17 = vld [vmem:[#allocation7 + $0x8] sm:$0xff]  ;;  %v320_v19 = vld [vmem:[#allocation7 + $0x98] sm:$0xff]  ;;  %p758_p11 = scmp.ne.s32.totalorder %s1053_s24, %s757_s16  ;;  %s837_s5 = smov [#allocation8]  }
  0x6f   : > { %564 = vmatprep.subr.bf16.mxu0 %v563_v9  ;;  %v569_v20 = vpack.c.bf16 %v302_v17, %v301_v14  ;;  %v571_v21 = vpack.c.bf16 %v320_v19, %v319_v18  ;;  %v303_v22 = vld [vmem:[#allocation7 + $0x10] sm:$0xff]  ;;  %v304_v23 = vld [vmem:[#allocation7 + $0x18] sm:$0xff]  ;;  %v321_v24 = vld [vmem:[#allocation7 + $0xa0] sm:$0xff]  ;;  %s761_s7 = sshll.u32 %s837_s5, 4  ;;  %s762_s7 = int_to_ptr.vmem [resolvable:$false] %s761_s7 }
  0x70   : > { %568 = vmatprep.subr.bf16.mxu1 %v567_v16  ;;  %v322_v25 = vld [vmem:[#allocation7 + $0xa8] sm:$0xff]  ;;  %v573_v26 = vpack.c.bf16 %v304_v23, %v303_v22  ;;  %v215_v27 = vld [vmem:[%s1033_s30] sm:$0xff]  ;;  %v305_v29 = vld [vmem:[#allocation7 + $0x20] sm:$0xff]  ;;  %p759_p1 = pnand %p758_p11, %p1113_p0  ;;  %s763_s8 = scalar_lea.vmem %s762_s7, 256 }
  0x71   : > { %570 = vmatpush3.bf16.msra.mxu1 %v569_v20  ;;  %v575_v28 = vpack.c.bf16 %v322_v25, %v321_v24  ;;  %v306_v30 = vld [vmem:[#allocation7 + $0x28] sm:$0xff]  ;;  %v323_v31 = vld [vmem:[#allocation7 + $0xb0] sm:$0xff]  ;;  %v324_v32 = vld [vmem:[#allocation7 + $0xb8] sm:$0xff]  ;;  %p764_p5 = scmp.lt.s32.totalorder %s1053_s24, %s762_s7  ;;  %p765_p9 = scmp.lt.s32.totalorder %s763_s8, %s757_s16 }
  0x72   : > { %566 = vmatpush1.bf16.msra.mxu0 %v565_v15  ;;  %572 = vmatprep.subr.bf16.mxu1 %v571_v21  ;;  %v577_v33 = vpack.c.bf16 %v306_v30, %v305_v29  ;;  %v579_v34 = vpack.c.bf16 %v324_v32, %v323_v31  ;;  %v307_v35 = vld [vmem:[#allocation7 + $0x30] sm:$0xff]  ;;  %v308_v36 = vld [vmem:[#allocation7 + $0x38] sm:$0xff]  ;;  %v325_v37 = vld [vmem:[#allocation7 + $0xc0] sm:$0xff]  ;;  %p760_p3 = pneg %p759_p1 }
  0x73   : > { %v326_v38 = vld [vmem:[#allocation7 + $0xc8] sm:$0xff]  ;;  %v581_v39 = vpack.c.bf16 %v308_v36, %v307_v35  ;;  %v309_v41 = vld [vmem:[#allocation7 + $0x40] sm:$0xff]  ;;  %v327_v43 = vld [vmem:[#allocation7 + $0xd0] sm:$0xff]  ;;  %p766_p12 = por %p765_p9, %p764_p5 }
  0x74   : > { %v583_v40 = vpack.c.bf16 %v326_v38, %v325_v37  ;;  %v310_v42 = vld [vmem:[#allocation7 + $0x48] sm:$0xff]  ;;  %v328_v44 = vld [vmem:[#allocation7 + $0xd8] sm:$0xff]  ;;  %v311_v47 = vld [vmem:[#allocation7 + $0x50] sm:$0xff] }
  0x75   : > { %519 = vmatmul.mubr.msk.f32.vlgmr.msra.gmra.mrb[0].mxu0 %vm224_vm0, %v215_v27  ;;  %574 = vmatpush3.bf16.msra.mxu1 %v573_v26  ;;  %v585_v45 = vpack.c.bf16 %v310_v42, %v309_v41  ;;  %v587_v46 = vpack.c.bf16 %v328_v44, %v327_v43  ;;  %v312_v48 = vld [vmem:[#allocation7 + $0x58] sm:$0xff]  ;;  %v329_v49 = vld [vmem:[#allocation7 + $0xe0] sm:$0xff]  ;;  %v330_v50 = vld [vmem:[#allocation7 + $0xe8] sm:$0xff]  ;;  %p767_p2 = pnand %p766_p12, %p760_p3 }
  0x76   : > { %576 = vmatprep.subr.bf16.mxu1 %v575_v28  ;;  %v589_v51 = vpack.c.bf16 %v312_v48, %v311_v47  ;;  %v591_v52 = vpack.c.bf16 %v330_v50, %v329_v49  ;;  %v313_v53 = vld [vmem:[#allocation7 + $0x60] sm:$0xff]  ;;  %v314_v54 = vld [vmem:[#allocation7 + $0x68] sm:$0xff]  ;;  %v331_v56 = vld [vmem:[#allocation7 + $0xf0] sm:$0xff] }
  0x77   : > { %v593_v55 = vpack.c.bf16 %v314_v54, %v313_v53  ;;  %v332_v57 = vld [vmem:[#allocation7 + $0xf8] sm:$0xff]  ;;  %v315_v59 = vld [vmem:[#allocation7 + $0x70] sm:$0xff] }
  0x78   : > { %v595_v58 = vpack.c.bf16 %v332_v57, %v331_v56  ;;  %v316_v60 = vld [vmem:[#allocation7 + $0x78] sm:$0xff] }
  0x79   : > { %578 = vmatpush3.bf16.msra.mxu1 %v577_v33  ;;  %v597_v61 = vpack.c.bf16 %v316_v60, %v315_v59 }
  0x7a   : > { %580 = vmatprep.subr.bf16.mxu1 %v579_v34 }
  0x7d   : > { %582 = vmatpush3.bf16.msra.mxu1 %v581_v39 }
  0x7e   : > { %584 = vmatprep.subr.bf16.mxu1 %v583_v40 }
  0x81   : > { %586 = vmatpush3.bf16.msra.mxu1 %v585_v45 }
  0x82   : > { %588 = vmatprep.subr.bf16.mxu1 %v587_v46 }
  0x85   : > { %590 = vmatpush3.bf16.msra.mxu1 %v589_v51 }
  0x86   : > { %592 = vmatprep.subr.bf16.mxu1 %v591_v52 }
  0x89   : > { %594 = vmatpush3.bf16.msra.mxu1 %v593_v55 }
  0x8a   : > { %596 = vmatprep.subr.bf16.mxu1 %v595_v58 }
  0x8d   : > { %598 = vmatpush3.bf16.msra.mxu1 %v597_v61 }
 0x148   : > { %v294_v62 = vpop.f32.mrb[0].mxu0 }
 0x149   : > { %v296_v63 = vpop.f32.mrb[1].mxu0  ;;  %v299_v1 = vmax.f32 %v294_v62, 0.0 }
 0x14a   : > { %v300_v0 = vmax.f32 %v296_v63, 0.0 }
 0x14c   : > { %397 = vmatprep.mubr.f32.mxu1 %v300_v0 }
 0x14d   : > { %398 = vmatmul.mubr.f32.vlgmr.msra.gmra.mrb[0].mxu1 %v299_v1 }
 0x220   : > { %v556_v2 = vpop.f32.mrb[0].mxu1 }
 0x221   : > { %v557_v3 = vpop.f32.mrb[1].mxu1 }
 0x222   : > { %v558_v4 = vadd.f32 %v557_v3, %v556_v2 }
 0x224   : > { %403 = vst.msk [vmem:[%s214_s20] sm:$0xff] %vm224_vm0, %v558_v4 }
 0x225   : > { %770 = shalt.err (!%p767_p2)
}
 0x226   : > { %s771_s23 = scalar_lea.hbm %s1051_s22, 128  ;;  %s775_s17 = scalar_lea.hbm %s1099_s3, 256 }
 0x227   : > { %p772_p13 = scmp.ne.s32.totalorder %s1051_s22, %s771_s23  ;;  %p776_p4 = scmp.lt.u32.totalorder %s1051_s22, %s1099_s3 }
 0x228   : > { %p777_p7 = scmp.lt.u32.totalorder %s775_s17, %s771_s23  ;;  %p779_p11 = scmp.lt.u32.totalorder %s771_s23, %s1051_s22 }
 0x229   : > { %p773_p6 = pnand %p772_p13, %p1113_p0 }
 0x22a   : > { %p778_p8 = por %p777_p7, %p776_p4 }
 0x22b   : > { %p774_p10 = pneg %p773_p6 }
 0x22c   : > { %p780_p1 = por %p779_p11, %p778_p8 }
 0x22e   : > { %p781_p3 = pnand %p780_p1, %p774_p10 }
 0x230   : > { %784 = shalt.err (!%p781_p3)
}
 0x231   : > { %609 = dma.vmem_to_hbm [thread:$0]  (%p1113_p0), %s1053_s24, 128, %s1051_s22, %s405_s4  }
 0x232 PF: > { %s430_s29 = sand.u32 1, %s815_s12   ;;  %p1114_p5 = scmp.ne.s32.totalorder %s1104_s19, 0 }
 0x233   : > { %p1115_p9 = scmp.ge.s32.totalorder %s827_s15, 2  ;;  %s431_s30 = scalar_lea.sflag [#allocation4], %s430_s29 }
 0x235   : > { %p623_p12 = pnand %p1115_p9, %p1114_p5 }
 0x237   : > { %810 = dma.done.wait (!%p623_p12), %s431_s30, 128  }
 0x238   : > { %812 = vsyncadd (!%p623_p12), %s431_s30, 4294967168  ;;  %p17_p2 = scmp.ge.s32.totalorder %s968_s6, 4   ;;  %s1116_s12 = smov %s819_s13 }
 0x239   : > { %s1117_s13 = smov %s823_s14  ;;  %s1118_s14 = smov %s977_s9 }
 0x23a   : > { %s1119_s15 = smov %s968_s6  ;;  %19 = sbr.rel (!%p17_p2) target bundleno = 6 (0x6), region = 85 }
 0x241   :  { %436 = vsyncpa [#allocation3], 1 }
 0x242   :  { %438 = vsyncpa [#allocation3 + $0x1], 1 }
 0x243   :  { %439 = vsyncpa [#allocation6], 1 }
 0x244   :  { %440 = vsyncpa [#allocation4], 1 }
 0x245   :  { %442 = vsyncpa [#allocation4 + $0x1], 1 }

</bundles_post_ra>
